<compile_context>
chip_gen: v7x
topology: tpu7x:2x2x1
jax: 0.10.0
libtpu: 0.0.40
codegen_flags: <defaults>
</compile_context>

<pallas_src>
import functools

import jax
import jax.numpy as jnp
from jax.experimental import pallas as pl
from jax.experimental.pallas import tpu as pltpu


# ----------------------------------------------------------------------------
# Pallas kernel: stream (tr, 128) tiles, accumulate SSE into an (8,128) vreg.
# ----------------------------------------------------------------------------
def _sse_kernel(yh_ref, y_ref, out_ref, acc_ref, *, n_steps, rows_valid,
                need_mask):
    c = pl.program_id(0)          # split axis ("parallel", megacore on v7x)
    k = pl.program_id(1)          # streaming/reduction axis ("arbitrary")

    @pl.when(k == 0)
    def _init():
        acc_ref[...] = jnp.zeros_like(acc_ref)

    # Upcast first (f32 MSE semantics), subtract/square/accumulate in f32.
    d = yh_ref[...].astype(jnp.float32) - y_ref[...].astype(jnp.float32)
    d2 = d * d

    tr, lanes = d2.shape
    if need_mask:
        # Boundary blocks are padded with unspecified data by the pipeline
        # (no runtime bounds check) -> zero invalid rows by global row index.
        base = (c * n_steps + k) * tr
        row = base + jax.lax.broadcasted_iota(jnp.int32, (tr, lanes), 0)
        d2 = jnp.where(row < rows_valid, d2, 0.0)

    # Fold tr rows down to a single (8,128) vreg with pure VPU vreg adds
    # (the reshape keeps (8,128) tiles intact -> no data movement, no XLU).
    acc_ref[...] += d2.reshape(tr // 8, 8, lanes).sum(axis=0)

    @pl.when(k == n_steps - 1)
    def _flush():
        out_ref[0] = acc_ref[...]


def _chip_defaults(itemsize):
    """Per-generation (num_splits, rows_per_block) defaults."""
    lanes = 128
    kind = ""
    try:
        kind = jax.devices()[0].device_kind.lower()
    except Exception:  # pragma: no cover - be conservative if query fails
        pass
    # Multi-TensorCore chips (megacore): v4 / v5p / v7x.  Single-TC "lite"
    # chips (v5e, v6e): no split, ~1 MiB blocks are already ~85% of roofline.
    multi_tc = any(t in kind for t in ("v7", "7x", "v5p", "v4")) and \
        "lite" not in kind
    block_bytes = (4 << 20) if multi_tc else (1 << 20)
    num_splits = 2 if multi_tc else 1
    rows_per_block = max(block_bytes // (lanes * itemsize), 8)
    return num_splits, rows_per_block


def pallas_mse(y_hat: jax.Array, y: jax.Array, *,
               rows_per_block: int | None = None,
               num_splits: int | None = None) -> jax.Array:
    """Mean squared error over all elements, computed with a Pallas kernel."""
    assert y_hat.shape == y.shape, "y_hat and y must have identical shapes"
    assert y_hat.dtype == y.dtype, "y_hat and y must have identical dtypes"

    total = int(y_hat.size)
    if total == 0:
        # Mean over an empty tensor is NaN (matches jnp.mean / torch.mean).
        return jnp.float32(float("nan"))

    lanes = 128
    itemsize = jnp.dtype(y_hat.dtype).itemsize
    sublane = 16 if itemsize == 2 else 8

    def_splits, def_rows = _chip_defaults(itemsize)
    if num_splits is None:
        num_splits = def_splits
    if rows_per_block is None:
        rows_per_block = def_rows

    yh_flat = y_hat.reshape(-1)
    y_flat = y.reshape(-1)

    rem = total % lanes
    if rem:
        # Rare ragged (<128 elem) tail: pad with < 128 zeros (exact for SSE).
        # This is the ONLY case that copies the inputs; the common
        # total % 128 == 0 case is fully copy-free.
        pad = lanes - rem
        yh_flat = jnp.pad(yh_flat, (0, pad))
        y_flat = jnp.pad(y_flat, (0, pad))
    rows = yh_flat.shape[0] // lanes

    if rows < sublane:
        # Tiny input (< one sublane-aligned row block): kernel launch /
        # pipeline overhead dominates, compute directly.
        d = yh_flat.astype(jnp.float32) - y_flat.astype(jnp.float32)
        return (jnp.sum(d * d) / float(total)).astype(jnp.float32)

    yh2 = yh_flat.reshape(rows, lanes)   # free reshape (contiguous)
    y2 = y_flat.reshape(rows, lanes)

    # Row tile: multiple of the sublane pack, never larger than the rows that
    # are sublane-aligned (so the block row-dim never exceeds the array dim).
    tr = max(sublane, min(int(rows_per_block), (rows // sublane) * sublane))
    tr = (tr // sublane) * sublane
    nb = -(-rows // tr)                       # number of row-blocks
    num_splits = max(1, min(int(num_splits), nb))
    n_steps = -(-nb // num_splits)

    need_clamp = num_splits * n_steps > nb    # some grid points are over-range
    need_mask = num_splits * n_steps * tr != rows

    def in_index(c, k):
        b = c * n_steps + k
        if need_clamp:
            b = jnp.minimum(b, nb - 1)        # keep the DMA window in bounds
        return (b, 0)

    kernel = functools.partial(_sse_kernel, n_steps=n_steps, rows_valid=rows,
                               need_mask=need_mask)

    cost = pl.CostEstimate(
        flops=3 * total,                      # sub, mul, add per element
        transcendentals=0,
        bytes_accessed=2 * total * itemsize + num_splits * 8 * lanes * 4,
    )

    partial = pl.pallas_call(
        kernel,
        out_shape=jax.ShapeDtypeStruct((num_splits, 8, lanes), jnp.float32),
        grid_spec=pltpu.PrefetchScalarGridSpec(
            num_scalar_prefetch=0,
            grid=(num_splits, n_steps),
            in_specs=[
                pl.BlockSpec((tr, lanes), in_index),
                pl.BlockSpec((tr, lanes), in_index),
            ],
            out_specs=pl.BlockSpec((1, 8, lanes), lambda c, k: (c, 0, 0)),
            scratch_shapes=[pltpu.VMEM((8, lanes), jnp.float32)],
        ),
        compiler_params=pltpu.CompilerParams(
            dimension_semantics=("parallel", "arbitrary")),
        cost_estimate=cost,
    )(yh2, y2)

    # Tiny final reduce (<= num_splits * 1024 f32) + exact Python-float divide.
    sse = jnp.sum(partial, dtype=jnp.float32)
    return (sse / float(total)).astype(jnp.float32)


# ----------------------------------------------------------------------------
# BaseLoss: exact semantic mirror of the PyTorch module.
# ----------------------------------------------------------------------------
class BaseLoss:
    def __init__(self, config):
        # config is a dictionary containing all the parameters relevant to
        # training (no parameters / weights are created here).
        self.config = config

    def forward(self, y_hat, y):
        # TODO(synk): abstract in the reference module — no compute to lower.
        raise NotImplementedError

    def __call__(self, y_hat, y):
        return self.forward(y_hat, y)


class ExampleMSELoss(BaseLoss):
    """Example concrete subclass whose hot path runs in the Pallas kernel."""

    def forward(self, y_hat, y):
        return pallas_mse(y_hat, y)


# ----------------------------------------------------------------------------
# Demo / smoke test
# ----------------------------------------------------------------------------
if __name__ == "__main__":
    key = jax.random.PRNGKey(0)
    k1, k2, k3, k4, k5, k6 = jax.random.split(key, 6)

    # NCHW inputs, small shapes: batch=2, channels=4, spatial=16.
    y_hat = jax.random.normal(k1, (2, 4, 16, 16), dtype=jnp.float32)
    y = jax.random.normal(k2, (2, 4, 16, 16), dtype=jnp.float32)

    config = {"name": "base_loss", "reduction": "mean"}

    # 1) Exact BaseLoss semantics: forward raises NotImplementedError.
    base = BaseLoss(config)
    raised = False
    try:
        base(y_hat, y)
    except NotImplementedError:
        raised = True
    assert raised, "BaseLoss.forward must raise NotImplementedError"

    # 2) Concrete subclass runs the Pallas reduction kernel (copy-free path).
    loss_fn = ExampleMSELoss(config)
    loss = jax.block_until_ready(loss_fn(y_hat, y))
    ref = jnp.mean((y_hat - y) ** 2)
    assert jnp.allclose(loss, ref, rtol=1e-5, atol=1e-5), (loss, ref)

    # 3) Multi-step accumulation path (force several grid steps, one split).
    loss_ms = jax.block_until_ready(
        pallas_mse(y_hat, y, rows_per_block=8, num_splits=1))
    assert jnp.allclose(loss_ms, ref, rtol=1e-5, atol=1e-5), (loss_ms, ref)

    # 4) bf16 inputs: upcast to f32, accumulate in f32.
    yh_bf = y_hat.astype(jnp.bfloat16)
    y_bf = y.astype(jnp.bfloat16)
    loss_bf = jax.block_until_ready(pallas_mse(yh_bf, y_bf))
    ref_bf = jnp.mean((yh_bf.astype(jnp.float32) - y_bf.astype(jnp.float32)) ** 2)
    assert jnp.allclose(loss_bf, ref_bf, rtol=1e-3, atol=1e-3), (loss_bf, ref_bf)

    # 5) Rows not a multiple of the block -> in-kernel mask, zero copies.
    a17 = jax.random.normal(k3, (2, 4, 17, 16), dtype=jnp.float32)
    b17 = jax.random.normal(k4, (2, 4, 17, 16), dtype=jnp.float32)
    ref17 = jnp.mean((a17 - b17) ** 2)
    loss17 = jax.block_until_ready(pallas_mse(a17, b17))
    assert jnp.allclose(loss17, ref17, rtol=1e-5, atol=1e-5), (loss17, ref17)

    # 6) Forced 2-way split with an uneven block count -> clamped index + mask.
    loss17s = jax.block_until_ready(
        pallas_mse(a17, b17, rows_per_block=8, num_splits=2))
    assert jnp.allclose(loss17s, ref17, rtol=1e-5, atol=1e-5), (loss17s, ref17)

    # 7) Ragged total (not a multiple of 128): small tail pad + mask.
    ar = jax.random.normal(k5, (3, 700), dtype=jnp.float32)
    br = jax.random.normal(k6, (3, 700), dtype=jnp.float32)
    refr = jnp.mean((ar - br) ** 2)
    lossr = jax.block_until_ready(pallas_mse(ar, br))
    assert jnp.allclose(lossr, refr, rtol=1e-5, atol=1e-5), (lossr, refr)

    print("KERNEL_OK")
</pallas_src>

<mosaic_0001>
module attributes {stable_mosaic.version = 11 : i64} {
  func.func @_sse_kernel(%arg0: i32, %arg1: i32, %arg2: memref<16x128xf32, #tpu.memory_space<vmem>>, %arg3: memref<16x128xf32, #tpu.memory_space<vmem>>, %arg4: memref<1x8x128xf32, #tpu.memory_space<vmem>>, %arg5: memref<8x128xf32, #tpu.memory_space<vmem>>) attributes {dimension_semantics = [#tpu.dimension_semantics<parallel>, #tpu.dimension_semantics<arbitrary>], iteration_bounds = array<i64: 1, 1>, scalar_prefetch = 0 : i64, scratch_operands = 1 : i64, tpu.core_type = #tpu.core_type<tc>, window_params = [{transform_indices = @transform_0, window_bounds = array<i64: 16, 128>}, {transform_indices = @transform_1, window_bounds = array<i64: 16, 128>}, {transform_indices = @transform_2, window_bounds = array<i64: 1, 8, 128>}]} {
    %c0_i32 = arith.constant 0 : i32
    %0 = arith.cmpi eq, %arg1, %c0_i32 : i32
    %1 = arith.extui %0 : i1 to i32
    %c0_i32_0 = arith.constant 0 : i32
    %2 = arith.cmpi ne, %1, %c0_i32_0 : i32
    scf.if %2 {
      %cst_10 = arith.constant 0.000000e+00 : f32
      %15 = vector.broadcast %cst_10 : f32 to vector<8x128xf32>
      %c0_11 = arith.constant 0 : index
      %c0_12 = arith.constant 0 : index
      %16 = vector.load %arg5[%c0_11, %c0_12] : memref<8x128xf32, #tpu.memory_space<vmem>>, vector<8x128xf32>
      tpu.vector_store %arg5[%c0_11, %c0_12], %15 {strides = array<i32>} : memref<8x128xf32, #tpu.memory_space<vmem>>, vector<8x128xf32>,
    } else {
    }
    %c0 = arith.constant 0 : index
    %c0_1 = arith.constant 0 : index
    %3 = vector.load %arg2[%c0, %c0_1] : memref<16x128xf32, #tpu.memory_space<vmem>>, vector<16x128xf32>
    %c0_2 = arith.constant 0 : index
    %c0_3 = arith.constant 0 : index
    %4 = vector.load %arg3[%c0_2, %c0_3] : memref<16x128xf32, #tpu.memory_space<vmem>>, vector<16x128xf32>
    %5 = arith.subf %3, %4 : vector<16x128xf32>
    %6 = arith.mulf %5, %5 : vector<16x128xf32>
    %c0_4 = arith.constant 0 : index
    %c0_5 = arith.constant 0 : index
    %7 = vector.load %arg5[%c0_4, %c0_5] : memref<8x128xf32, #tpu.memory_space<vmem>>, vector<8x128xf32>
    %8 = vector.shape_cast %6 : vector<16x128xf32> to vector<2x8x128xf32>
    %cst = arith.constant dense<0.000000e+00> : vector<8x128xf32>
    %9 = vector.multi_reduction <add>, %8, %cst [0] : vector<2x8x128xf32> to vector<8x128xf32>
    %10 = arith.addf %7, %9 : vector<8x128xf32>
    %c0_6 = arith.constant 0 : index
    %c0_7 = arith.constant 0 : index
    %11 = vector.load %arg5[%c0_6, %c0_7] : memref<8x128xf32, #tpu.memory_space<vmem>>, vector<8x128xf32>
    tpu.vector_store %arg5[%c0_6, %c0_7], %10 {strides = array<i32>} : memref<8x128xf32, #tpu.memory_space<vmem>>, vector<8x128xf32>,
    %c0_i32_8 = arith.constant 0 : i32
    %12 = arith.cmpi eq, %arg1, %c0_i32_8 : i32
    %13 = arith.extui %12 : i1 to i32
    %c0_i32_9 = arith.constant 0 : i32
    %14 = arith.cmpi ne, %13, %c0_i32_9 : i32
    scf.if %14 {
      %c0_10 = arith.constant 0 : index
      %c0_11 = arith.constant 0 : index
      %15 = vector.load %arg5[%c0_10, %c0_11] : memref<8x128xf32, #tpu.memory_space<vmem>>, vector<8x128xf32>
      %c0_12 = arith.constant 0 : index
      %c0_13 = arith.constant 0 : index
      %c0_14 = arith.constant 0 : index
      %16 = vector.load %arg4[%c0_12, %c0_13, %c0_14] : memref<1x8x128xf32, #tpu.memory_space<vmem>>, vector<1x8x128xf32>
      %17 = vector.shape_cast %16 : vector<1x8x128xf32> to vector<8x128xf32>
      %18 = vector.shape_cast %15 : vector<8x128xf32> to vector<1x8x128xf32>
      tpu.vector_store %arg4[%c0_12, %c0_13, %c0_14], %18 {strides = array<i32>} : memref<1x8x128xf32, #tpu.memory_space<vmem>>, vector<1x8x128xf32>,
    } else {
    }
    return
  }
  func.func @transform_0(%arg0: i32, %arg1: i32) -> (i32, i32) {
    %c1_i32 = arith.constant 1 : i32
    %0 = arith.muli %arg0, %c1_i32 : i32
    %1 = arith.addi %0, %arg1 : i32
    %c0_i32 = arith.constant 0 : i32
    %c0_i32_0 = arith.constant 0 : i32
    return %1, %c0_i32 : i32, i32
  }
  func.func @transform_1(%arg0: i32, %arg1: i32) -> (i32, i32) {
    %c1_i32 = arith.constant 1 : i32
    %0 = arith.muli %arg0, %c1_i32 : i32
    %1 = arith.addi %0, %arg1 : i32
    %c0_i32 = arith.constant 0 : i32
    %c0_i32_0 = arith.constant 0 : i32
    return %1, %c0_i32 : i32, i32
  }
  func.func @transform_2(%arg0: i32, %arg1: i32) -> (i32, i32, i32) {
    %c0_i32 = arith.constant 0 : i32
    %c0_i32_0 = arith.constant 0 : i32
    %c0_i32_1 = arith.constant 0 : i32
    return %arg0, %c0_i32, %c0_i32_0 : i32, i32, i32
  }
}

</mosaic_0001>

<bundles_post_ra>
// kernel: tpu_custom_call.1
= control target key start
LH: loop header
LB: loop body
LE: loop exit
PB: predicated region body
PF: predicated region fallthrough
CT: control target
= control target key end

     0   :  { %7 = vsyncpa [#allocation4], 0  ;;  %s223_s0 = inlined_call_operand.hbm [shape: f32[16,128], index: 0, kind: input, shape index: {}]   ;;  %s224_s1 = inlined_call_operand.hbm [shape: f32[16,128], index: 1, kind: input, shape index: {}]   ;;  %s225_s2 = inlined_call_operand.hbm [shape: f32[1,8,128], index: 2, kind: output, shape index: {}]  }
   0x1   :  { %8 = vsyncpa [#allocation7], 0 }
   0x2   :  { %9 = vsyncpa [#allocation5], 0  ;;  %s167_s9 = smov [#allocation3]   ;;  %s95_s13 = scalar_lea.hbm %s223_s0, 256 }
   0x3   :  { %s19_s10 = sshll.u32 %s167_s9, 4  ;;  %p96_p0 = scmp.ne.s32.totalorder %s223_s0, %s95_s13  ;;  %s20_s10 = int_to_ptr.vmem [resolvable:$true] %s19_s10 }
   0x4   :  { %p99_p1 = scmp.lt.u32.totalorder %s95_s13, %s223_s0 }
   0x6   :  { %p101_p2 = pnand %p99_p1, %p96_p0 }
   0x8   :  { %104 = shalt.err (!%p101_p2)
}
   0x9   :  { %s105_s18 = scalar_lea.vmem %s20_s10, 256  ;;  %p110_p4 = scmp.lt.s32.totalorder %s20_s10, %s20_s10 }
   0xa   :  { %p106_p3 = scmp.ne.s32.totalorder %s20_s10, %s105_s18  ;;  %p111_p5 = scmp.lt.s32.totalorder %s105_s18, %s105_s18 }
   0xc   :  { %p112_p6 = por %p111_p5, %p110_p4 }
   0xe   :  { %p113_p7 = pnand %p112_p6, %p106_p3 }
  0x10   :  { %116 = shalt.err (!%p113_p7)
}
  0x11   :  { %s168_s19 = smov 128   ;;  %s169_s20 = smov 8  }
  0x12   :  { %25 = dma.hbm_to_vmem [thread:$0]  %s223_s0, 256, %s20_s10, [#allocation4], %s168_s19, %s168_s19, %s169_s20  }
  0x13   :  { %s170_s23 = smov [#allocation6]   ;;  %s117_s27 = scalar_lea.hbm %s224_s1, 256 }
  0x14   :  { %s35_s24 = sshll.u32 %s170_s23, 4  ;;  %p118_p8 = scmp.ne.s32.totalorder %s224_s1, %s117_s27  ;;  %s36_s24 = int_to_ptr.vmem [resolvable:$true] %s35_s24 }
  0x15   :  { %p121_p9 = scmp.lt.u32.totalorder %s117_s27, %s224_s1 }
  0x17   :  { %p123_p10 = pnand %p121_p9, %p118_p8 }
  0x19   :  { %126 = shalt.err (!%p123_p10)
}
  0x1a   :  { %s127_s4 = scalar_lea.vmem %s36_s24, 256  ;;  %p132_p12 = scmp.lt.s32.totalorder %s36_s24, %s36_s24 }
  0x1b   :  { %p128_p11 = scmp.ne.s32.totalorder %s36_s24, %s127_s4  ;;  %p133_p13 = scmp.lt.s32.totalorder %s127_s4, %s127_s4 }
  0x1d   :  { %p134_p0 = por %p133_p13, %p132_p12 }
  0x1f   :  { %p135_p1 = pnand %p134_p0, %p128_p11 }
  0x21   :  { %138 = shalt.err (!%p135_p1)
}
  0x22   :  { %41 = dma.hbm_to_vmem [thread:$0]  %s224_s1, 256, %s36_s24, [#allocation7], %s168_s19, %s168_s19, %s169_s20  }
  0x23   :  { %161 = dma.done.wait [#allocation4], 256  }
  0x24   :  { %162 = vsyncadd [#allocation4], 4294967040 }
  0x25   :  { %163 = dma.done.wait [#allocation7], 256  }
  0x26   :  { %164 = vsyncadd [#allocation7], 4294967040  ;;  %v57_v0 = vld [vmem:[#allocation3] sm:$0xff]  ;;  %v58_v1 = vld [vmem:[#allocation3 + $0x8] sm:$0xff]  ;;  %s171_s6 = smov [#allocation8]  }
  0x27   :  { %v59_v2 = vld [vmem:[#allocation6] sm:$0xff]  ;;  %v60_v3 = vld [vmem:[#allocation6 + $0x8] sm:$0xff]  ;;  %s80_s7 = sshll.u32 %s171_s6, 4  ;;  %s81_s7 = int_to_ptr.vmem [resolvable:$true] %s80_s7 }
  0x28   :  { %v61_v4 = vsub.f32 %v57_v0, %v59_v2  ;;  %v62_v5 = vsub.f32 %v58_v1, %v60_v3  ;;  %s139_s8 = scalar_lea.vmem %s81_s7, 128  ;;  %p144_p3 = scmp.lt.s32.totalorder %s81_s7, %s81_s7 }
  0x29   :  { %p140_p2 = scmp.ne.s32.totalorder %s81_s7, %s139_s8  ;;  %p145_p4 = scmp.lt.s32.totalorder %s139_s8, %s139_s8 }
  0x2a   :  { %v63_v6 = vmul.f32 %v61_v4, %v61_v4  ;;  %v64_v7 = vmul.f32 %v62_v5, %v62_v5 }
  0x2b   :  { %p146_p5 = por %p145_p4, %p144_p3 }
  0x2c   :  { %v66_v8 = vadd.f32 %v64_v7, %v63_v6 }
  0x2d   :  { %p147_p6 = pnand %p146_p5, %p140_p2 }
  0x2e   :  { %73 = vst [vmem:[#allocation8] sm:$0xff] %v66_v8 }
  0x2f   :  { %150 = shalt.err (!%p147_p6)
}
  0x30   :  { %s151_s10 = scalar_lea.hbm %s225_s2, 128 }
  0x31   :  { %p152_p7 = scmp.ne.s32.totalorder %s225_s2, %s151_s10  ;;  %p155_p8 = scmp.lt.u32.totalorder %s151_s10, %s225_s2 }
  0x33   :  { %p157_p9 = pnand %p155_p8, %p152_p7 }
  0x35   :  { %160 = shalt.err (!%p157_p9)
}
  0x36   :  { %83 = dma.vmem_to_hbm [thread:$0]  %s81_s7, 128, %s225_s2, [#allocation5]  }
  0x37   :  { %165 = dma.done.wait [#allocation5], 128  }
  0x38   :  { %166 = vsyncadd [#allocation5], 4294967168 }
  0x39   :  { %87 = vsyncpa [#allocation4], 1 }
  0x3a   :  { %88 = vsyncpa [#allocation7], 1 }
  0x3b   :  { %89 = vsyncpa [#allocation5], 1 }

</bundles_post_ra>
